<compile_context>
chip_gen: v6e
topology: v6e:2x2x1
jax: 0.10.0
libtpu: 0.0.40
codegen_flags: <defaults>
</compile_context>

<pallas_src>
import math

import jax
import jax.numpy as jnp
import numpy as np
from jax import lax
from jax.experimental import pallas as pl
from jax.experimental.pallas import tpu as pltpu


def _round_up(x, m):
    return ((x + m - 1) // m) * m


def _largest_tile(dim, cap):
    """Largest multiple of 128 that divides `dim` (a multiple of 128), <= cap."""
    best = 128
    t = 128
    while t <= min(dim, cap):
        if dim % t == 0:
            best = t
        t += 128
    return best


# ---------------------------------------------------------------------------
# Kernels
# ---------------------------------------------------------------------------
def _fused_matmul_kernel(x_ref, t_ref, bias_ref, o_ref):
    # x_ref:    (TB, KP)   batch block of flattened (channel, position) inputs
    # t_ref:    (KP, TN)   column slab of the fused spectral operator
    # bias_ref: (1,  TN)   flattened, padded bias (broadcasts over batch rows)
    # o_ref:    (TB, TN)   lane-dense output slab
    o_ref[...] = (
        jnp.dot(x_ref[...], t_ref[...], preferred_element_type=jnp.float32)
        + bias_ref[...]
    )


def _fused_matmul_acc_kernel(x_ref, t_ref, bias_ref, o_ref, acc_ref):
    # Same as above but with the contraction dimension tiled (grid axis 2) and
    # accumulated in an f32 VMEM scratch; bias added on the final k step.
    k = pl.program_id(2)

    @pl.when(k == 0)
    def _():
        acc_ref[...] = jnp.zeros_like(acc_ref)

    acc_ref[...] += jnp.dot(x_ref[...], t_ref[...],
                            preferred_element_type=jnp.float32)

    @pl.when(k == pl.num_programs(2) - 1)
    def _():
        o_ref[...] = acc_ref[...] + bias_ref[...]


# ---------------------------------------------------------------------------
# Fused operator construction (precompute per weight set, outside the kernel)
# ---------------------------------------------------------------------------
def _build_fused_operator(w_real, w_imag, N):
    """T[i, n, o, n'] = sum_m (c_m/N) * Re{ W[i,o,m] * exp(2*pi*i*m*(n'-n)/N) }."""
    Ci, Co, M = w_real.shape
    k = np.arange(M)
    c = np.where(k == 0, 1.0, 2.0)
    if N % 2 == 0:
        c = np.where(k == N // 2, 1.0, c)
    n = np.arange(N)
    delta = n[None, :] - n[:, None]                               # (n, n') -> n' - n
    ang = 2.0 * np.pi * k[:, None, None] * delta[None, :, :] / N  # (M, N, N)
    cosb = jnp.asarray((c[:, None, None] / N) * np.cos(ang), jnp.float32)
    sinb = jnp.asarray((c[:, None, None] / N) * np.sin(ang), jnp.float32)
    T = (jnp.einsum('iom,mnp->inop', w_real.astype(jnp.float32), cosb,
                    precision=lax.Precision.HIGHEST)
         - jnp.einsum('iom,mnp->inop', w_imag.astype(jnp.float32), sinb,
                      precision=lax.Precision.HIGHEST))           # (Ci, N, Co, N)
    return T.reshape(Ci * N, Co * N)


# ---------------------------------------------------------------------------
# Wrapper
# ---------------------------------------------------------------------------
def spectral_conv1d(x, w_real, w_imag, bias, modes):
    """x: (B, Ci, N) f32; w_*: (Ci, Co, modes) f32; bias: (Co,) f32 -> (B, Co, N)."""
    B, Ci, N = x.shape
    Co = w_real.shape[1]
    assert modes <= N // 2 + 1

    # Fused real operator (absorbs rfft, complex channel mixing, irfft).
    T = _build_fused_operator(w_real, w_imag, N)          # (Ci*N, Co*N)

    K, Nout = Ci * N, Co * N
    KP = _round_up(K, 128)                                # lane-dense contraction dim
    NP = _round_up(Nout, 128)                             # lane-dense output dim
    TB = min(128, _round_up(B, 8))                        # sublane-aligned batch block
    BP = _round_up(B, TB)

    # Tile sizes: TN >= 128 lanes; TK sized so the double-buffered (TK, TN)
    # operator slab stays within ~8 MiB (v7x has only 64 MiB VMEM total).
    TN = _largest_tile(NP, 512)
    cap_k = max(128, ((8 << 20) // (2 * TN * 4)) // 128 * 128)
    TK = _largest_tile(KP, cap_k)
    nk = KP // TK

    # Zero-padding: padded rows of x and padded rows/cols of T are zero, so the
    # extra lanes contribute nothing and results are unchanged.
    x_p = jnp.zeros((BP, KP), jnp.float32).at[:B, :K].set(
        x.reshape(B, K).astype(jnp.float32))
    T_p = jnp.zeros((KP, NP), jnp.float32).at[:K, :Nout].set(T)
    bias_flat = jnp.broadcast_to(
        bias.astype(jnp.float32)[:, None], (Co, N)).reshape(Nout)
    bias_p = jnp.zeros((1, NP), jnp.float32).at[0, :Nout].set(bias_flat)

    if nk == 1:
        # Fast path: whole contraction fits one MXU pass per output tile.
        out_p = pl.pallas_call(
            _fused_matmul_kernel,
            out_shape=jax.ShapeDtypeStruct((BP, NP), jnp.float32),
            grid=(BP // TB, NP // TN),
            in_specs=[
                pl.BlockSpec((TB, KP), lambda b, j: (b, 0)),
                pl.BlockSpec((KP, TN), lambda b, j: (0, j)),
                pl.BlockSpec((1, TN), lambda b, j: (0, j)),
            ],
            out_specs=pl.BlockSpec((TB, TN), lambda b, j: (b, j)),
            compiler_params=pltpu.CompilerParams(
                dimension_semantics=("parallel", "parallel")),
        )(x_p, T_p, bias_p)
    else:
        # General path: tiled contraction with f32 accumulator (P1 + P3).
        out_p = pl.pallas_call(
            _fused_matmul_acc_kernel,
            out_shape=jax.ShapeDtypeStruct((BP, NP), jnp.float32),
            grid=(BP // TB, NP // TN, nk),
            in_specs=[
                pl.BlockSpec((TB, TK), lambda b, j, k: (b, k)),
                pl.BlockSpec((TK, TN), lambda b, j, k: (k, j)),
                pl.BlockSpec((1, TN), lambda b, j, k: (0, j)),
            ],
            out_specs=pl.BlockSpec((TB, TN), lambda b, j, k: (b, j)),
            scratch_shapes=[pltpu.VMEM((TB, TN), jnp.float32)],
            compiler_params=pltpu.CompilerParams(
                dimension_semantics=("parallel", "parallel", "arbitrary")),
        )(x_p, T_p, bias_p)

    return out_p[:B, :Nout].reshape(B, Co, N)


# ---------------------------------------------------------------------------
# Pure-JAX reference (mirrors the PyTorch forward exactly)
# ---------------------------------------------------------------------------
def spectral_conv1d_ref(x, w_real, w_imag, bias, modes):
    B, Ci, N = x.shape
    Co = w_real.shape[1]
    x_ft = jnp.fft.rfft(x)                                          # (B, Ci, N//2+1)
    w = w_real + 1j * w_imag                                        # (Ci, Co, M)
    out_ft = jnp.zeros((B, Co, N // 2 + 1), dtype=jnp.complex64)
    mixed = jnp.einsum('bix,iox->box', x_ft[:, :, :modes], w)
    out_ft = out_ft.at[:, :, :modes].set(mixed)
    out = jnp.fft.irfft(out_ft, n=N)
    return out + bias.reshape(1, -1, 1)


if __name__ == "__main__":
    # Small shapes consistent with the module: B=2, in_channels=4,
    # out_channels=6, spatial N=16, modes=5.
    B, Ci, Co, N, modes = 2, 4, 6, 16, 5

    key = jax.random.PRNGKey(0)
    kx, kwr, kwi = jax.random.split(key, 3)

    x = jax.random.normal(kx, (B, Ci, N), dtype=jnp.float32)

    # Deterministic xavier_normal_-style init for the complex weights
    # (fan_in = Co*modes, fan_out = Ci*modes per PyTorch's fan computation).
    fan_in, fan_out = Co * modes, Ci * modes
    std = math.sqrt(2.0 / (fan_in + fan_out))
    w_real = std * jax.random.normal(kwr, (Ci, Co, modes), dtype=jnp.float32)
    w_imag = std * jax.random.normal(kwi, (Ci, Co, modes), dtype=jnp.float32)
    bias = jnp.zeros((Co,), dtype=jnp.float32)          # nn.init.constant_(bias, 0.0)

    out = spectral_conv1d(x, w_real, w_imag, bias, modes)
    out = jax.block_until_ready(out)

    ref = jax.block_until_ready(spectral_conv1d_ref(x, w_real, w_imag, bias, modes))
    assert out.shape == (B, Co, N)
    np.testing.assert_allclose(np.asarray(out), np.asarray(ref), rtol=1e-3, atol=1e-4)

    print("KERNEL_OK")
</pallas_src>

<mosaic_0001>
module attributes {stable_mosaic.version = 11 : i64} {
  func.func @_fused_matmul_kernel(%arg0: i32, %arg1: i32, %arg2: memref<8x128xf32, #tpu.memory_space<vmem>>, %arg3: memref<128x128xf32, #tpu.memory_space<vmem>>, %arg4: memref<1x128xf32, #tpu.memory_space<vmem>>, %arg5: memref<8x128xf32, #tpu.memory_space<vmem>>) attributes {dimension_semantics = [#tpu.dimension_semantics<parallel>, #tpu.dimension_semantics<parallel>], iteration_bounds = array<i64: 1, 1>, scalar_prefetch = 0 : i64, scratch_operands = 0 : i64, tpu.core_type = #tpu.core_type<tc>, window_params = [{transform_indices = @transform_0, window_bounds = array<i64: 8, 128>}, {transform_indices = @transform_1, window_bounds = array<i64: 128, 128>}, {transform_indices = @transform_2, window_bounds = array<i64: 1, 128>}, {transform_indices = @transform_3, window_bounds = array<i64: 8, 128>}]} {
    %c0 = arith.constant 0 : index
    %c0_0 = arith.constant 0 : index
    %0 = vector.load %arg2[%c0, %c0_0] : memref<8x128xf32, #tpu.memory_space<vmem>>, vector<8x128xf32>
    %c0_1 = arith.constant 0 : index
    %c0_2 = arith.constant 0 : index
    %1 = vector.load %arg3[%c0_1, %c0_2] : memref<128x128xf32, #tpu.memory_space<vmem>>, vector<128x128xf32>
    %cst = arith.constant dense<0.000000e+00> : vector<8x128xf32>
    %2 = tpu.matmul %0, %1, %cst {dimension_numbers = #tpu.dot_dimension_numbers<[1], [0], [0], [1], [0, 0, 1, 1], [], []>} : vector<8x128xf32>, vector<128x128xf32>, vector<8x128xf32> -> vector<8x128xf32>
    %c0_3 = arith.constant 0 : index
    %c0_4 = arith.constant 0 : index
    %3 = vector.load %arg4[%c0_3, %c0_4] : memref<1x128xf32, #tpu.memory_space<vmem>>, vector<1x128xf32>
    %4 = vector.broadcast %3 : vector<1x128xf32> to vector<8x128xf32>
    %5 = arith.addf %2, %4 : vector<8x128xf32>
    %c0_5 = arith.constant 0 : index
    %c0_6 = arith.constant 0 : index
    %6 = vector.load %arg5[%c0_5, %c0_6] : memref<8x128xf32, #tpu.memory_space<vmem>>, vector<8x128xf32>
    tpu.vector_store %arg5[%c0_5, %c0_6], %5 {strides = array<i32>} : memref<8x128xf32, #tpu.memory_space<vmem>>, vector<8x128xf32>,
    return
  }
  func.func @transform_0(%arg0: i32, %arg1: i32) -> (i32, i32) {
    %c0_i32 = arith.constant 0 : i32
    %c0_i32_0 = arith.constant 0 : i32
    return %arg0, %c0_i32 : i32, i32
  }
  func.func @transform_1(%arg0: i32, %arg1: i32) -> (i32, i32) {
    %c0_i32 = arith.constant 0 : i32
    %c0_i32_0 = arith.constant 0 : i32
    return %c0_i32, %arg1 : i32, i32
  }
  func.func @transform_2(%arg0: i32, %arg1: i32) -> (i32, i32) {
    %c0_i32 = arith.constant 0 : i32
    %c0_i32_0 = arith.constant 0 : i32
    return %c0_i32, %arg1 : i32, i32
  }
  func.func @transform_3(%arg0: i32, %arg1: i32) -> (i32, i32) {
    %c0_i32 = arith.constant 0 : i32
    return %arg0, %arg1 : i32, i32
  }
}

</mosaic_0001>

<bundles_post_ra>
// kernel: tpu_custom_call.1
= control target key start
LH: loop header
LB: loop body
LE: loop exit
PB: predicated region body
PF: predicated region fallthrough
CT: control target
= control target key end

     0   :  { %8 = vsyncpa [#allocation3], 0  ;;  %s317_s0 = inlined_call_operand.hbm [shape: f32[8,128], index: 0, kind: input, shape index: {}]   ;;  %s318_s1 = inlined_call_operand.hbm [shape: f32[128,128], index: 1, kind: input, shape index: {}]   ;;  %s319_s2 = inlined_call_operand.vmem [shape: f32[1,128], index: 2, kind: input, shape index: {}]   ;;  %s320_s3 = inlined_call_operand.hbm [shape: f32[8,128], index: 3, kind: output, shape index: {}]  }
   0x1   :  { %9 = vsyncpa [#allocation6], 0 }
   0x2   :  { %10 = vsyncpa [#allocation4], 0  ;;  %s278_s12 = smov [#allocation2]   ;;  %s279_s14 = smov [#allocation5]  }
   0x3   :  { %s17_s13 = sshll.u32 %s278_s12, 4  ;;  %s26_s15 = sshll.u32 %s279_s14, 4  ;;  %s18_s13 = int_to_ptr.vmem [resolvable:$true] %s17_s13  ;;  %s27_s15 = int_to_ptr.vmem [resolvable:$true] %s26_s15 }
   0x4   :  { %s220_s16 = scalar_lea.vmem %s18_s13, 128  ;;  %p225_p1 = scmp.lt.s32.totalorder %s18_s13, %s18_s13 }
   0x5   :  { %p221_p0 = scmp.ne.s32.totalorder %s18_s13, %s220_s16  ;;  %p226_p2 = scmp.lt.s32.totalorder %s220_s16, %s220_s16 }
   0x7   :  { %p227_p3 = por %p226_p2, %p225_p1 }
   0x9   :  { %p228_p4 = pnand %p227_p3, %p221_p0 }
   0xb   :  { %231 = shalt.err (!%p228_p4)
}
   0xc   :  { %20 = dma.hbm_to_vmem [thread:$0]  %s317_s0, 128, %s18_s13, [#allocation3]  }
   0xd   :  { %s240_s19 = scalar_lea.vmem %s27_s15, 2048  ;;  %p245_p6 = scmp.lt.s32.totalorder %s27_s15, %s27_s15 }
   0xe   :  { %p241_p5 = scmp.ne.s32.totalorder %s27_s15, %s240_s19  ;;  %p246_p7 = scmp.lt.s32.totalorder %s240_s19, %s240_s19 }
  0x10   :  { %p247_p8 = por %p246_p7, %p245_p6 }
  0x12   :  { %p248_p9 = pnand %p247_p8, %p241_p5 }
  0x14   :  { %251 = shalt.err (!%p248_p9)
}
  0x15   :  { %s280_s20 = smov 128   ;;  %s281_s21 = smov 8  }
  0x16   :  { %32 = dma.hbm_to_vmem [thread:$0]  %s318_s1, 2048, %s27_s15, [#allocation6], %s280_s20, %s280_s20, %s281_s21  }
  0x17   :  { %272 = dma.done.wait [#allocation3], 128  }
  0x18   :  { %273 = vsyncadd [#allocation3], 4294967168 }
  0x19   :  { %274 = dma.done.wait [#allocation6], 2048  }
  0x1a   :  { %275 = vsyncadd [#allocation6], 4294965248  ;;  %v282_v0 = vmov 0.0   ;;  %vm283_vm0 = vmmov 0   ;;  %v57_v1 = vld [vmem:[#allocation5 + $0x78] sm:$0xff]  ;;  %v56_v2 = vld [vmem:[#allocation5 + $0x70] sm:$0xff] }
  0x1b   :  { %170 = vmatprep.subr.mxu0 %v282_v0  ;;  %202 = vmatprep.mubr.msk.f32.mxu0 %vm283_vm0, %v282_v0  ;;  %v55_v3 = vld [vmem:[#allocation5 + $0x68] sm:$0xff]  ;;  %v54_v4 = vld [vmem:[#allocation5 + $0x60] sm:$0xff]  ;;  %v53_v5 = vld [vmem:[#allocation5 + $0x58] sm:$0xff]  ;;  %s284_s24 = smov [#allocation7]  }
  0x1c   :  { %171 = vmatpush3.msra.mxu0 %v57_v1  ;;  %v52_v6 = vld [vmem:[#allocation5 + $0x50] sm:$0xff]  ;;  %v51_v7 = vld [vmem:[#allocation5 + $0x48] sm:$0xff]  ;;  %v50_v8 = vld [vmem:[#allocation5 + $0x40] sm:$0xff]  ;;  %s142_s25 = sshll.u32 %s284_s24, 4  ;;  %s143_s25 = int_to_ptr.vmem [resolvable:$true] %s142_s25 }
  0x1d   :  { %172 = vmatprep.subr.mxu0 %v282_v0  ;;  %v49_v9 = vld [vmem:[#allocation5 + $0x38] sm:$0xff]  ;;  %v48_v10 = vld [vmem:[#allocation5 + $0x30] sm:$0xff]  ;;  %v47_v11 = vld [vmem:[#allocation5 + $0x28] sm:$0xff]  ;;  %s252_s26 = scalar_lea.vmem %s143_s25, 128  ;;  %p257_p11 = scmp.lt.s32.totalorder %s143_s25, %s143_s25 }
  0x1e   :  { %173 = vmatpush3.msra.mxu0 %v56_v2  ;;  %v46_v12 = vld [vmem:[#allocation5 + $0x20] sm:$0xff]  ;;  %v45_v13 = vld [vmem:[#allocation5 + $0x18] sm:$0xff]  ;;  %v44_v14 = vld [vmem:[#allocation5 + $0x10] sm:$0xff]  ;;  %p253_p10 = scmp.ne.s32.totalorder %s143_s25, %s252_s26  ;;  %p258_p12 = scmp.lt.s32.totalorder %s252_s26, %s252_s26 }
  0x1f   :  { %174 = vmatprep.subr.mxu0 %v282_v0  ;;  %v43_v15 = vld [vmem:[#allocation5 + $0x8] sm:$0xff]  ;;  %v42_v16 = vld [vmem:[#allocation5] sm:$0xff]  ;;  %v41_v17 = vld [vmem:[#allocation2] sm:$0xff] }
  0x20   :  { %175 = vmatpush3.msra.mxu0 %v55_v3  ;;  %v152_v18 = vld [vmem:[%s319_s2] ss:$0 sm:$0xff]  ;;  %p259_p13 = por %p258_p12, %p257_p11 }
  0x21   :  { %176 = vmatprep.subr.mxu0 %v282_v0 }
  0x22   :  { %177 = vmatpush3.msra.mxu0 %v54_v4  ;;  %p260_p0 = pnand %p259_p13, %p253_p10 }
  0x23   :  { %178 = vmatprep.subr.mxu0 %v282_v0 }
  0x24   :  { %179 = vmatpush3.msra.mxu0 %v53_v5 }
  0x25   :  { %180 = vmatprep.subr.mxu0 %v282_v0 }
  0x26   :  { %181 = vmatpush3.msra.mxu0 %v52_v6 }
  0x27   :  { %182 = vmatprep.subr.mxu0 %v282_v0 }
  0x28   :  { %183 = vmatpush3.msra.mxu0 %v51_v7 }
  0x29   :  { %184 = vmatprep.subr.mxu0 %v282_v0 }
  0x2a   :  { %185 = vmatpush3.msra.mxu0 %v50_v8 }
  0x2b   :  { %186 = vmatprep.subr.mxu0 %v282_v0 }
  0x2c   :  { %187 = vmatpush3.msra.mxu0 %v49_v9 }
  0x2d   :  { %188 = vmatprep.subr.mxu0 %v282_v0 }
  0x2e   :  { %189 = vmatpush3.msra.mxu0 %v48_v10 }
  0x2f   :  { %190 = vmatprep.subr.mxu0 %v282_v0 }
  0x30   :  { %191 = vmatpush3.msra.mxu0 %v47_v11 }
  0x31   :  { %192 = vmatprep.subr.mxu0 %v282_v0 }
  0x32   :  { %193 = vmatpush3.msra.mxu0 %v46_v12 }
  0x33   :  { %194 = vmatprep.subr.mxu0 %v282_v0 }
  0x34   :  { %195 = vmatpush3.msra.mxu0 %v45_v13 }
  0x35   :  { %196 = vmatprep.subr.mxu0 %v282_v0 }
  0x36   :  { %197 = vmatpush3.msra.mxu0 %v44_v14 }
  0x37   :  { %198 = vmatprep.subr.mxu0 %v282_v0 }
  0x38   :  { %199 = vmatpush3.msra.mxu0 %v43_v15 }
  0x39   :  { %200 = vmatprep.subr.mxu0 %v282_v0 }
  0x3a   :  { %201 = vmatpush3.msra.mxu0 %v42_v16 }
  0x3b   :  { %203 = vmatmul.mubr.f32.vlgmr.msra.gmra.mxu0 %v41_v17 }
  0xfb   :  { %v131_v19 = vpop.f32.mrf.mxu0 }
  0xfc   :  { %v132_v20 = vadd.f32 %v152_v18, %v131_v19 }
  0xfd   :  { %v204_v21 = vpop.f32.mrf.mxu0 }
  0xfe   :  { %135 = vst [vmem:[#allocation7] sm:$0xff] %v132_v20 }
  0xff   :  { %263 = shalt.err (!%p260_p0)
}
 0x100   :  { %145 = dma.vmem_to_hbm [thread:$0]  %s143_s25, 128, %s320_s3, [#allocation4]  }
 0x101   :  { %276 = dma.done.wait [#allocation4], 128  }
 0x102   :  { %277 = vsyncadd [#allocation4], 4294967168 }
 0x103   :  { %149 = vsyncpa [#allocation3], 1 }
 0x104   :  { %150 = vsyncpa [#allocation6], 1 }
 0x105   :  { %151 = vsyncpa [#allocation4], 1 }

</bundles_post_ra>
